<compile_context>
chip_gen: v6e
topology: v6e:2x2x1
jax: 0.10.0
libtpu: 0.0.40
codegen_flags: <defaults>
</compile_context>

<pallas_src>
import jax
import jax.numpy as jnp
from jax.experimental import pallas as pl
from jax.experimental.pallas import tpu as pltpu

IN_DIM = 3
IN_PAD = 8          # sublane-aligned input features (zero-padded)
HID = 14
HID_PAD = 16        # sublane-aligned hidden width (zero-padded, numerically exact)
OUT_DIM = 3
OUT_PAD = 8         # sublane-aligned output features (rows 3..7 sliced off)
N_MID = 9           # number of hidden (14 -> 14) layers
SCALE = 4.5
TM_MAX = 2048       # batch columns (lanes) per grid tile


def _round_up(n, m):
    return ((n + m - 1) // m) * m


def mlp_kernel(xT_ref, w0_ref, b0_ref, wm_ref, bm_ref, wl_ref, bl_ref, o_ref):
    # Transposed layout: activations are (features, batch_tile); batch is the
    # 128-lane axis, so tanh / bias / scale / stores are lane-dense.
    # First layer: (16, 8) @ (8, TM) -> (16, TM)
    h = jnp.dot(w0_ref[...], xT_ref[...], preferred_element_type=jnp.float32)
    h = SCALE * jnp.tanh(h + b0_ref[...])

    # Middle layers: 9 x [(16, 16) @ (16, TM)], statically unrolled.
    for i in range(N_MID):
        h = jnp.dot(wm_ref[i], h, preferred_element_type=jnp.float32)
        h = SCALE * jnp.tanh(h + bm_ref[i])

    # Last layer: (8, 16) @ (16, TM) -> (8, TM), sigmoid. Rows 3..7 are padding.
    y = jnp.dot(wl_ref[...], h, preferred_element_type=jnp.float32)
    o_ref[...] = jax.nn.sigmoid(y + bl_ref[...])


def net_forward(x, params):
    """x: (batch, 3) f32 -> (batch, 3) f32, matching Net.forward."""
    w0, b0, wm, bm, wl, bl = pad_params(params)
    batch = x.shape[0]

    # Lane-granular batch padding (128), then tile:
    #  - tiles up to 2048 lanes amortize per-grid-step overhead
    #  - keep >= 2 tiles when possible so v7x can use both TensorCores.
    lane_batch = _round_up(batch, 128)
    num_tiles = max(1, pl.cdiv(lane_batch, TM_MAX))
    if lane_batch >= 256:
        num_tiles = max(num_tiles, 2)
    tm = _round_up(pl.cdiv(lane_batch, num_tiles), 128)
    padded_batch = tm * num_tiles

    # x^T zero-padded to (8, padded_batch): batch on the lane axis.
    xT = jnp.pad(x.T, ((0, IN_PAD - IN_DIM), (0, padded_batch - batch)))

    out = pl.pallas_call(
        mlp_kernel,
        out_shape=jax.ShapeDtypeStruct((OUT_PAD, padded_batch), jnp.float32),
        grid_spec=pltpu.PrefetchScalarGridSpec(
            num_scalar_prefetch=0,
            grid=(num_tiles,),
            in_specs=[
                # x^T streams per batch tile (lane axis).
                pl.BlockSpec((IN_PAD, tm), lambda i: (0, i)),
                # Weights/biases: constant index_map -> fetched once, VMEM-resident.
                pl.BlockSpec((HID_PAD, IN_PAD), lambda i: (0, 0)),
                pl.BlockSpec((HID_PAD, 1), lambda i: (0, 0)),
                pl.BlockSpec((N_MID, HID_PAD, HID_PAD), lambda i: (0, 0, 0)),
                pl.BlockSpec((N_MID, HID_PAD, 1), lambda i: (0, 0, 0)),
                pl.BlockSpec((OUT_PAD, HID_PAD), lambda i: (0, 0)),
                pl.BlockSpec((OUT_PAD, 1), lambda i: (0, 0)),
            ],
            out_specs=pl.BlockSpec((OUT_PAD, tm), lambda i: (0, i)),
        ),
        compiler_params=pltpu.CompilerParams(
            dimension_semantics=("parallel",),
        ),
    )(xT, w0, b0, wm, bm, wl, bl)

    # Drop output-feature padding (rows 3..7) and batch padding; back to (batch, 3).
    return out[:OUT_DIM, :batch].T


def init_params(key):
    """Deterministic init mimicking PyTorch Linear's U(-1/sqrt(fan_in), ...).

    Returns LOGICAL (unpadded) params; weights stored as (in, out),
    biases as (1, out) / (N_MID, 1, out), used as x @ w + b.
    """
    keys = jax.random.split(key, 2 * (2 + N_MID))
    k = iter(keys)

    def linear(fan_in, fan_out, kw, kb):
        bound = 1.0 / jnp.sqrt(float(fan_in))
        w = jax.random.uniform(kw, (fan_in, fan_out), jnp.float32, -bound, bound)
        b = jax.random.uniform(kb, (1, fan_out), jnp.float32, -bound, bound)
        return w, b

    w0, b0 = linear(IN_DIM, HID, next(k), next(k))

    wm_list, bm_list = [], []
    for _ in range(N_MID):
        w, b = linear(HID, HID, next(k), next(k))
        wm_list.append(w)
        bm_list.append(b)
    wm = jnp.stack(wm_list, axis=0)          # (9, 14, 14)
    bm = jnp.stack(bm_list, axis=0)          # (9, 1, 14)

    wl, bl = linear(HID, OUT_DIM, next(k), next(k))
    return w0, b0, wm, bm, wl, bl


def pad_params(params):
    """Transpose to the (out, in) kernel layout and zero-pad:
    hidden 14 -> 16, input 3 -> 8, output 3 -> 8.  Padded rows/cols are exact
    zeros, so padded lanes stay inert through all 11 layers."""
    w0, b0, wm, bm, wl, bl = params
    ph = HID_PAD - HID
    w0t = jnp.pad(w0.T, ((0, ph), (0, IN_PAD - IN_DIM)))                        # (16, 8)
    b0t = jnp.pad(b0.T, ((0, ph), (0, 0)))                                      # (16, 1)
    wmt = jnp.pad(jnp.transpose(wm, (0, 2, 1)), ((0, 0), (0, ph), (0, ph)))     # (9, 16, 16)
    bmt = jnp.pad(jnp.transpose(bm, (0, 2, 1)), ((0, 0), (0, ph), (0, 0)))      # (9, 16, 1)
    wlt = jnp.pad(wl.T, ((0, OUT_PAD - OUT_DIM), (0, ph)))                      # (8, 16)
    blt = jnp.pad(bl.T, ((0, OUT_PAD - OUT_DIM), (0, 0)))                       # (8, 1)
    return w0t, b0t, wmt, bmt, wlt, blt


def reference_forward(x, params):
    """Pure-JAX reference of the PyTorch forward (unpadded logical params)."""
    w0, b0, wm, bm, wl, bl = params
    h = SCALE * jnp.tanh(x @ w0 + b0)
    for i in range(N_MID):
        h = SCALE * jnp.tanh(h @ wm[i] + bm[i])
    return jax.nn.sigmoid(h @ wl + bl)


if __name__ == "__main__":
    key = jax.random.PRNGKey(0)
    pkey, xkey = jax.random.split(key)

    params = init_params(pkey)

    # batch=300 exercises the lane padding (300 -> 384 -> two 256-lane tiles)
    # and the >=2-tile grid path used for v7x megacore sharding.
    batch = 300
    x = jax.random.normal(xkey, (batch, IN_DIM), dtype=jnp.float32)

    out = net_forward(x, params)
    out = jax.block_until_ready(out)

    ref = reference_forward(x, params)
    assert out.shape == (batch, OUT_DIM)
    assert jnp.allclose(out, ref, atol=1e-5, rtol=1e-5), "mismatch vs reference"

    print("KERNEL_OK")
</pallas_src>

<mosaic_0001>
module attributes {stable_mosaic.version = 11 : i64} {
  func.func @mlp_kernel(%arg0: i32, %arg1: memref<8x256xf32, #tpu.memory_space<vmem>>, %arg2: memref<16x8xf32, #tpu.memory_space<vmem>>, %arg3: memref<16x1xf32, #tpu.memory_space<vmem>>, %arg4: memref<9x16x16xf32, #tpu.memory_space<vmem>>, %arg5: memref<9x16x1xf32, #tpu.memory_space<vmem>>, %arg6: memref<8x16xf32, #tpu.memory_space<vmem>>, %arg7: memref<8x1xf32, #tpu.memory_space<vmem>>, %arg8: memref<8x256xf32, #tpu.memory_space<vmem>>) attributes {dimension_semantics = [#tpu.dimension_semantics<parallel>], iteration_bounds = array<i64: 2>, scalar_prefetch = 0 : i64, scratch_operands = 0 : i64, tpu.core_type = #tpu.core_type<tc>, window_params = [{transform_indices = @transform_0, window_bounds = array<i64: 8, 256>}, {pipeline_mode = #tpu.pipeline_mode<synchronous>, transform_indices = @transform_1, window_bounds = array<i64: 16, 8>}, {pipeline_mode = #tpu.pipeline_mode<synchronous>, transform_indices = @transform_2, window_bounds = array<i64: 16, 1>}, {pipeline_mode = #tpu.pipeline_mode<synchronous>, transform_indices = @transform_3, window_bounds = array<i64: 9, 16, 16>}, {pipeline_mode = #tpu.pipeline_mode<synchronous>, transform_indices = @transform_4, window_bounds = array<i64: 9, 16, 1>}, {pipeline_mode = #tpu.pipeline_mode<synchronous>, transform_indices = @transform_5, window_bounds = array<i64: 8, 16>}, {pipeline_mode = #tpu.pipeline_mode<synchronous>, transform_indices = @transform_6, window_bounds = array<i64: 8, 1>}, {transform_indices = @transform_7, window_bounds = array<i64: 8, 256>}]} {
    %c0 = arith.constant 0 : index
    %c0_0 = arith.constant 0 : index
    %0 = vector.load %arg2[%c0, %c0_0] : memref<16x8xf32, #tpu.memory_space<vmem>>, vector<16x8xf32>
    %c0_1 = arith.constant 0 : index
    %c0_2 = arith.constant 0 : index
    %1 = vector.load %arg1[%c0_1, %c0_2] : memref<8x256xf32, #tpu.memory_space<vmem>>, vector<8x256xf32>
    %cst = arith.constant dense<0.000000e+00> : vector<16x256xf32>
    %2 = tpu.matmul %0, %1, %cst {dimension_numbers = #tpu.dot_dimension_numbers<[1], [0], [0], [1], [0, 0, 1, 1], [], []>} : vector<16x8xf32>, vector<8x256xf32>, vector<16x256xf32> -> vector<16x256xf32>
    %c0_3 = arith.constant 0 : index
    %c0_4 = arith.constant 0 : index
    %3 = vector.load %arg3[%c0_3, %c0_4] : memref<16x1xf32, #tpu.memory_space<vmem>>, vector<16x1xf32>
    %4 = vector.broadcast %3 : vector<16x1xf32> to vector<16x256xf32>
    %5 = arith.addf %2, %4 : vector<16x256xf32>
    %6 = math.tanh %5 : vector<16x256xf32>
    %cst_5 = arith.constant 4.500000e+00 : f32
    %7 = vector.broadcast %cst_5 : f32 to vector<16x256xf32>
    %8 = arith.mulf %7, %6 : vector<16x256xf32>
    %c0_6 = arith.constant 0 : index
    %c0_7 = arith.constant 0 : index
    %c0_8 = arith.constant 0 : index
    %9 = vector.load %arg4[%c0_6, %c0_7, %c0_8] : memref<9x16x16xf32, #tpu.memory_space<vmem>>, vector<1x16x16xf32>
    %10 = vector.shape_cast %9 : vector<1x16x16xf32> to vector<16x16xf32>
    %cst_9 = arith.constant dense<0.000000e+00> : vector<16x256xf32>
    %11 = tpu.matmul %10, %8, %cst_9 {dimension_numbers = #tpu.dot_dimension_numbers<[1], [0], [0], [1], [0, 0, 1, 1], [], []>} : vector<16x16xf32>, vector<16x256xf32>, vector<16x256xf32> -> vector<16x256xf32>
    %c0_10 = arith.constant 0 : index
    %c0_11 = arith.constant 0 : index
    %c0_12 = arith.constant 0 : index
    %12 = vector.load %arg5[%c0_10, %c0_11, %c0_12] : memref<9x16x1xf32, #tpu.memory_space<vmem>>, vector<1x16x1xf32>
    %13 = vector.shape_cast %12 : vector<1x16x1xf32> to vector<16x1xf32>
    %14 = vector.broadcast %13 : vector<16x1xf32> to vector<16x256xf32>
    %15 = arith.addf %11, %14 : vector<16x256xf32>
    %16 = math.tanh %15 : vector<16x256xf32>
    %cst_13 = arith.constant 4.500000e+00 : f32
    %17 = vector.broadcast %cst_13 : f32 to vector<16x256xf32>
    %18 = arith.mulf %17, %16 : vector<16x256xf32>
    %c1 = arith.constant 1 : index
    %c0_14 = arith.constant 0 : index
    %c0_15 = arith.constant 0 : index
    %19 = vector.load %arg4[%c1, %c0_14, %c0_15] : memref<9x16x16xf32, #tpu.memory_space<vmem>>, vector<1x16x16xf32>
    %20 = vector.shape_cast %19 : vector<1x16x16xf32> to vector<16x16xf32>
    %cst_16 = arith.constant dense<0.000000e+00> : vector<16x256xf32>
    %21 = tpu.matmul %20, %18, %cst_16 {dimension_numbers = #tpu.dot_dimension_numbers<[1], [0], [0], [1], [0, 0, 1, 1], [], []>} : vector<16x16xf32>, vector<16x256xf32>, vector<16x256xf32> -> vector<16x256xf32>
    %c1_17 = arith.constant 1 : index
    %c0_18 = arith.constant 0 : index
    %c0_19 = arith.constant 0 : index
    %22 = vector.load %arg5[%c1_17, %c0_18, %c0_19] : memref<9x16x1xf32, #tpu.memory_space<vmem>>, vector<1x16x1xf32>
    %23 = vector.shape_cast %22 : vector<1x16x1xf32> to vector<16x1xf32>
    %24 = vector.broadcast %23 : vector<16x1xf32> to vector<16x256xf32>
    %25 = arith.addf %21, %24 : vector<16x256xf32>
    %26 = math.tanh %25 : vector<16x256xf32>
    %cst_20 = arith.constant 4.500000e+00 : f32
    %27 = vector.broadcast %cst_20 : f32 to vector<16x256xf32>
    %28 = arith.mulf %27, %26 : vector<16x256xf32>
    %c2 = arith.constant 2 : index
    %c0_21 = arith.constant 0 : index
    %c0_22 = arith.constant 0 : index
    %29 = vector.load %arg4[%c2, %c0_21, %c0_22] : memref<9x16x16xf32, #tpu.memory_space<vmem>>, vector<1x16x16xf32>
    %30 = vector.shape_cast %29 : vector<1x16x16xf32> to vector<16x16xf32>
    %cst_23 = arith.constant dense<0.000000e+00> : vector<16x256xf32>
    %31 = tpu.matmul %30, %28, %cst_23 {dimension_numbers = #tpu.dot_dimension_numbers<[1], [0], [0], [1], [0, 0, 1, 1], [], []>} : vector<16x16xf32>, vector<16x256xf32>, vector<16x256xf32> -> vector<16x256xf32>
    %c2_24 = arith.constant 2 : index
    %c0_25 = arith.constant 0 : index
    %c0_26 = arith.constant 0 : index
    %32 = vector.load %arg5[%c2_24, %c0_25, %c0_26] : memref<9x16x1xf32, #tpu.memory_space<vmem>>, vector<1x16x1xf32>
    %33 = vector.shape_cast %32 : vector<1x16x1xf32> to vector<16x1xf32>
    %34 = vector.broadcast %33 : vector<16x1xf32> to vector<16x256xf32>
    %35 = arith.addf %31, %34 : vector<16x256xf32>
    %36 = math.tanh %35 : vector<16x256xf32>
    %cst_27 = arith.constant 4.500000e+00 : f32
    %37 = vector.broadcast %cst_27 : f32 to vector<16x256xf32>
    %38 = arith.mulf %37, %36 : vector<16x256xf32>
    %c3 = arith.constant 3 : index
    %c0_28 = arith.constant 0 : index
    %c0_29 = arith.constant 0 : index
    %39 = vector.load %arg4[%c3, %c0_28, %c0_29] : memref<9x16x16xf32, #tpu.memory_space<vmem>>, vector<1x16x16xf32>
    %40 = vector.shape_cast %39 : vector<1x16x16xf32> to vector<16x16xf32>
    %cst_30 = arith.constant dense<0.000000e+00> : vector<16x256xf32>
    %41 = tpu.matmul %40, %38, %cst_30 {dimension_numbers = #tpu.dot_dimension_numbers<[1], [0], [0], [1], [0, 0, 1, 1], [], []>} : vector<16x16xf32>, vector<16x256xf32>, vector<16x256xf32> -> vector<16x256xf32>
    %c3_31 = arith.constant 3 : index
    %c0_32 = arith.constant 0 : index
    %c0_33 = arith.constant 0 : index
    %42 = vector.load %arg5[%c3_31, %c0_32, %c0_33] : memref<9x16x1xf32, #tpu.memory_space<vmem>>, vector<1x16x1xf32>
    %43 = vector.shape_cast %42 : vector<1x16x1xf32> to vector<16x1xf32>
    %44 = vector.broadcast %43 : vector<16x1xf32> to vector<16x256xf32>
    %45 = arith.addf %41, %44 : vector<16x256xf32>
    %46 = math.tanh %45 : vector<16x256xf32>
    %cst_34 = arith.constant 4.500000e+00 : f32
    %47 = vector.broadcast %cst_34 : f32 to vector<16x256xf32>
    %48 = arith.mulf %47, %46 : vector<16x256xf32>
    %c4 = arith.constant 4 : index
    %c0_35 = arith.constant 0 : index
    %c0_36 = arith.constant 0 : index
    %49 = vector.load %arg4[%c4, %c0_35, %c0_36] : memref<9x16x16xf32, #tpu.memory_space<vmem>>, vector<1x16x16xf32>
    %50 = vector.shape_cast %49 : vector<1x16x16xf32> to vector<16x16xf32>
    %cst_37 = arith.constant dense<0.000000e+00> : vector<16x256xf32>
    %51 = tpu.matmul %50, %48, %cst_37 {dimension_numbers = #tpu.dot_dimension_numbers<[1], [0], [0], [1], [0, 0, 1, 1], [], []>} : vector<16x16xf32>, vector<16x256xf32>, vector<16x256xf32> -> vector<16x256xf32>
    %c4_38 = arith.constant 4 : index
    %c0_39 = arith.constant 0 : index
    %c0_40 = arith.constant 0 : index
    %52 = vector.load %arg5[%c4_38, %c0_39, %c0_40] : memref<9x16x1xf32, #tpu.memory_space<vmem>>, vector<1x16x1xf32>
    %53 = vector.shape_cast %52 : vector<1x16x1xf32> to vector<16x1xf32>
    %54 = vector.broadcast %53 : vector<16x1xf32> to vector<16x256xf32>
    %55 = arith.addf %51, %54 : vector<16x256xf32>
    %56 = math.tanh %55 : vector<16x256xf32>
    %cst_41 = arith.constant 4.500000e+00 : f32
    %57 = vector.broadcast %cst_41 : f32 to vector<16x256xf32>
    %58 = arith.mulf %57, %56 : vector<16x256xf32>
    %c5 = arith.constant 5 : index
    %c0_42 = arith.constant 0 : index
    %c0_43 = arith.constant 0 : index
    %59 = vector.load %arg4[%c5, %c0_42, %c0_43] : memref<9x16x16xf32, #tpu.memory_space<vmem>>, vector<1x16x16xf32>
    %60 = vector.shape_cast %59 : vector<1x16x16xf32> to vector<16x16xf32>
    %cst_44 = arith.constant dense<0.000000e+00> : vector<16x256xf32>
    %61 = tpu.matmul %60, %58, %cst_44 {dimension_numbers = #tpu.dot_dimension_numbers<[1], [0], [0], [1], [0, 0, 1, 1], [], []>} : vector<16x16xf32>, vector<16x256xf32>, vector<16x256xf32> -> vector<16x256xf32>
    %c5_45 = arith.constant 5 : index
    %c0_46 = arith.constant 0 : index
    %c0_47 = arith.constant 0 : index
    %62 = vector.load %arg5[%c5_45, %c0_46, %c0_47] : memref<9x16x1xf32, #tpu.memory_space<vmem>>, vector<1x16x1xf32>
    %63 = vector.shape_cast %62 : vector<1x16x1xf32> to vector<16x1xf32>
    %64 = vector.broadcast %63 : vector<16x1xf32> to vector<16x256xf32>
    %65 = arith.addf %61, %64 : vector<16x256xf32>
    %66 = math.tanh %65 : vector<16x256xf32>
    %cst_48 = arith.constant 4.500000e+00 : f32
    %67 = vector.broadcast %cst_48 : f32 to vector<16x256xf32>
    %68 = arith.mulf %67, %66 : vector<16x256xf32>
    %c6 = arith.constant 6 : index
    %c0_49 = arith.constant 0 : index
    %c0_50 = arith.constant 0 : index
    %69 = vector.load %arg4[%c6, %c0_49, %c0_50] : memref<9x16x16xf32, #tpu.memory_space<vmem>>, vector<1x16x16xf32>
    %70 = vector.shape_cast %69 : vector<1x16x16xf32> to vector<16x16xf32>
    %cst_51 = arith.constant dense<0.000000e+00> : vector<16x256xf32>
    %71 = tpu.matmul %70, %68, %cst_51 {dimension_numbers = #tpu.dot_dimension_numbers<[1], [0], [0], [1], [0, 0, 1, 1], [], []>} : vector<16x16xf32>, vector<16x256xf32>, vector<16x256xf32> -> vector<16x256xf32>
    %c6_52 = arith.constant 6 : index
    %c0_53 = arith.constant 0 : index
    %c0_54 = arith.constant 0 : index
    %72 = vector.load %arg5[%c6_52, %c0_53, %c0_54] : memref<9x16x1xf32, #tpu.memory_space<vmem>>, vector<1x16x1xf32>
    %73 = vector.shape_cast %72 : vector<1x16x1xf32> to vector<16x1xf32>
    %74 = vector.broadcast %73 : vector<16x1xf32> to vector<16x256xf32>
    %75 = arith.addf %71, %74 : vector<16x256xf32>
    %76 = math.tanh %75 : vector<16x256xf32>
    %cst_55 = arith.constant 4.500000e+00 : f32
    %77 = vector.broadcast %cst_55 : f32 to vector<16x256xf32>
    %78 = arith.mulf %77, %76 : vector<16x256xf32>
    %c7 = arith.constant 7 : index
    %c0_56 = arith.constant 0 : index
    %c0_57 = arith.constant 0 : index
    %79 = vector.load %arg4[%c7, %c0_56, %c0_57] : memref<9x16x16xf32, #tpu.memory_space<vmem>>, vector<1x16x16xf32>
    %80 = vector.shape_cast %79 : vector<1x16x16xf32> to vector<16x16xf32>
    %cst_58 = arith.constant dense<0.000000e+00> : vector<16x256xf32>
    %81 = tpu.matmul %80, %78, %cst_58 {dimension_numbers = #tpu.dot_dimension_numbers<[1], [0], [0], [1], [0, 0, 1, 1], [], []>} : vector<16x16xf32>, vector<16x256xf32>, vector<16x256xf32> -> vector<16x256xf32>
    %c7_59 = arith.constant 7 : index
    %c0_60 = arith.constant 0 : index
    %c0_61 = arith.constant 0 : index
    %82 = vector.load %arg5[%c7_59, %c0_60, %c0_61] : memref<9x16x1xf32, #tpu.memory_space<vmem>>, vector<1x16x1xf32>
    %83 = vector.shape_cast %82 : vector<1x16x1xf32> to vector<16x1xf32>
    %84 = vector.broadcast %83 : vector<16x1xf32> to vector<16x256xf32>
    %85 = arith.addf %81, %84 : vector<16x256xf32>
    %86 = math.tanh %85 : vector<16x256xf32>
    %cst_62 = arith.constant 4.500000e+00 : f32
    %87 = vector.broadcast %cst_62 : f32 to vector<16x256xf32>
    %88 = arith.mulf %87, %86 : vector<16x256xf32>
    %c8 = arith.constant 8 : index
    %c0_63 = arith.constant 0 : index
    %c0_64 = arith.constant 0 : index
    %89 = vector.load %arg4[%c8, %c0_63, %c0_64] : memref<9x16x16xf32, #tpu.memory_space<vmem>>, vector<1x16x16xf32>
    %90 = vector.shape_cast %89 : vector<1x16x16xf32> to vector<16x16xf32>
    %cst_65 = arith.constant dense<0.000000e+00> : vector<16x256xf32>
    %91 = tpu.matmul %90, %88, %cst_65 {dimension_numbers = #tpu.dot_dimension_numbers<[1], [0], [0], [1], [0, 0, 1, 1], [], []>} : vector<16x16xf32>, vector<16x256xf32>, vector<16x256xf32> -> vector<16x256xf32>
    %c8_66 = arith.constant 8 : index
    %c0_67 = arith.constant 0 : index
    %c0_68 = arith.constant 0 : index
    %92 = vector.load %arg5[%c8_66, %c0_67, %c0_68] : memref<9x16x1xf32, #tpu.memory_space<vmem>>, vector<1x16x1xf32>
    %93 = vector.shape_cast %92 : vector<1x16x1xf32> to vector<16x1xf32>
    %94 = vector.broadcast %93 : vector<16x1xf32> to vector<16x256xf32>
    %95 = arith.addf %91, %94 : vector<16x256xf32>
    %96 = math.tanh %95 : vector<16x256xf32>
    %cst_69 = arith.constant 4.500000e+00 : f32
    %97 = vector.broadcast %cst_69 : f32 to vector<16x256xf32>
    %98 = arith.mulf %97, %96 : vector<16x256xf32>
    %c0_70 = arith.constant 0 : index
    %c0_71 = arith.constant 0 : index
    %99 = vector.load %arg6[%c0_70, %c0_71] : memref<8x16xf32, #tpu.memory_space<vmem>>, vector<8x16xf32>
    %cst_72 = arith.constant dense<0.000000e+00> : vector<8x256xf32>
    %100 = tpu.matmul %99, %98, %cst_72 {dimension_numbers = #tpu.dot_dimension_numbers<[1], [0], [0], [1], [0, 0, 1, 1], [], []>} : vector<8x16xf32>, vector<16x256xf32>, vector<8x256xf32> -> vector<8x256xf32>
    %c0_73 = arith.constant 0 : index
    %c0_74 = arith.constant 0 : index
    %101 = vector.load %arg7[%c0_73, %c0_74] : memref<8x1xf32, #tpu.memory_space<vmem>>, vector<8x1xf32>
    %102 = vector.broadcast %101 : vector<8x1xf32> to vector<8x256xf32>
    %103 = arith.addf %100, %102 : vector<8x256xf32>
    %104 = arith.negf %103 : vector<8x256xf32>
    %105 = math.exp %104 : vector<8x256xf32>
    %cst_75 = arith.constant 1.000000e+00 : f32
    %106 = vector.broadcast %cst_75 : f32 to vector<8x256xf32>
    %107 = arith.addf %106, %105 : vector<8x256xf32>
    %108 = arith.divf %106, %107 : vector<8x256xf32>
    %c0_76 = arith.constant 0 : index
    %c0_77 = arith.constant 0 : index
    %109 = vector.load %arg8[%c0_76, %c0_77] : memref<8x256xf32, #tpu.memory_space<vmem>>, vector<8x256xf32>
    tpu.vector_store %arg8[%c0_76, %c0_77], %108 {strides = array<i32>} : memref<8x256xf32, #tpu.memory_space<vmem>>, vector<8x256xf32>,
    return
  }
  func.func @transform_0(%arg0: i32) -> (i32, i32) {
    %c0_i32 = arith.constant 0 : i32
    %c0_i32_0 = arith.constant 0 : i32
    return %c0_i32, %arg0 : i32, i32
  }
  func.func @transform_1(%arg0: i32) -> (i32, i32) {
    %c0_i32 = arith.constant 0 : i32
    %c0_i32_0 = arith.constant 0 : i32
    %c0_i32_1 = arith.constant 0 : i32
    return %c0_i32, %c0_i32_0 : i32, i32
  }
  func.func @transform_2(%arg0: i32) -> (i32, i32) {
    %c0_i32 = arith.constant 0 : i32
    %c0_i32_0 = arith.constant 0 : i32
    %c0_i32_1 = arith.constant 0 : i32
    return %c0_i32, %c0_i32_0 : i32, i32
  }
  func.func @transform_3(%arg0: i32) -> (i32, i32, i32) {
    %c0_i32 = arith.constant 0 : i32
    %c0_i32_0 = arith.constant 0 : i32
    %c0_i32_1 = arith.constant 0 : i32
    %c0_i32_2 = arith.constant 0 : i32
    return %c0_i32, %c0_i32_0, %c0_i32_1 : i32, i32, i32
  }
  func.func @transform_4(%arg0: i32) -> (i32, i32, i32) {
    %c0_i32 = arith.constant 0 : i32
    %c0_i32_0 = arith.constant 0 : i32
    %c0_i32_1 = arith.constant 0 : i32
    %c0_i32_2 = arith.constant 0 : i32
    return %c0_i32, %c0_i32_0, %c0_i32_1 : i32, i32, i32
  }
  func.func @transform_5(%arg0: i32) -> (i32, i32) {
    %c0_i32 = arith.constant 0 : i32
    %c0_i32_0 = arith.constant 0 : i32
    %c0_i32_1 = arith.constant 0 : i32
    return %c0_i32, %c0_i32_0 : i32, i32
  }
  func.func @transform_6(%arg0: i32) -> (i32, i32) {
    %c0_i32 = arith.constant 0 : i32
    %c0_i32_0 = arith.constant 0 : i32
    %c0_i32_1 = arith.constant 0 : i32
    return %c0_i32, %c0_i32_0 : i32, i32
  }
  func.func @transform_7(%arg0: i32) -> (i32, i32) {
    %c0_i32 = arith.constant 0 : i32
    %c0_i32_0 = arith.constant 0 : i32
    return %c0_i32, %arg0 : i32, i32
  }
}

</mosaic_0001>

<bundles_post_ra>
// kernel: tpu_custom_call.1
= control target key start
LH: loop header
LB: loop body
LE: loop exit
PB: predicated region body
PF: predicated region fallthrough
CT: control target
= control target key end

     0   :  { %12 = vsyncpa [#allocation3], 0  ;;  %s2081_s0 = inlined_call_operand.vmem [shape: f32[8,512], index: 0, kind: input, shape index: {}]   ;;  %s2082_s1 = inlined_call_operand.vmem [shape: f32[16,8], index: 1, kind: input, shape index: {}]   ;;  %s2083_s2 = inlined_call_operand.vmem [shape: f32[16,1], index: 2, kind: input, shape index: {}]   ;;  %s2084_s3 = inlined_call_operand.vmem [shape: f32[9,16,16], index: 3, kind: input, shape index: {}]   ;;  %s2085_s4 = inlined_call_operand.vmem [shape: f32[9,16,1], index: 4, kind: input, shape index: {}]   ;;  %s2086_s5 = inlined_call_operand.vmem [shape: f32[8,16], index: 5, kind: input, shape index: {}]   ;;  %s2087_s6 = inlined_call_operand.vmem [shape: f32[8,1], index: 6, kind: input, shape index: {}]   ;;  %s2088_s7 = inlined_call_operand.hbm [shape: f32[8,512], index: 7, kind: output, shape index: {}]  }
   0x1   :  { %14 = vsyncpa [#allocation3 + $0x1], 0  ;;  %s1823_s24 = smov 0   ;;  %s1825_s25 = smov 0  }
   0x2   :  { %s1827_s26 = smov 0   ;;  %s1829_s27 = smov 0  }
   0x3 LB: > { %s1844_s28 = sadd.s32 4294967295, %s1778_s27   ;;  %s1519_s29 = sadd.s32 4294967294, %s1778_s27   ;;  %s1778_s27 = sphi %s1829_s27, %s2094_s27   ;;  %s1774_s26 = sphi %s1827_s26, %s2093_s26   ;;  %s1770_s25 = sphi %s1825_s25, %s2092_s25   ;;  %s1766_s24 = sphi %s1823_s24, %s2091_s24  }
   0x4   : > { %s1848_s30 = sadd.s32 1, %s1778_s27   ;;  %s179_s8 = sadd.s32 1, %s1774_s26 }
   0x5   : > { %s176_s9 = ssub.s32 %s1778_s27, %s1848_s30  ;;  %p189_p0 = scmp.ne.s32.totalorder %s1774_s26, %s1770_s25 }
   0x6   : > { %p177_p1 = scmp.eq.s32.totalorder %s176_s9, 0  ;;  %p190_p2 = scmp.eq.s32.totalorder %s1844_s28, 1 }
   0x7   : > { %p195_p3 = scmp.ne.s32.totalorder %s1770_s25, %s1766_s24  ;;  %p196_p4 = scmp.eq.s32.totalorder %s1519_s29, 1 }
   0x8   : > { %s1859_s10 = scalar_select %p177_p1, %s1774_s26, %s179_s8  }
   0x9   : > { %p1861_p5 = por %p190_p2, %p189_p0  ;;  %p1865_p6 = por %p196_p4, %p195_p3 }
   0xa   : > { %p1522_p7 = scmp.ge.s32.totalorder %s1778_s27, 1  ;;  %p241_p8 = scmp.lt.s32.totalorder %s1778_s27, 3 }
   0xc   : > { %p242_p9 = pnand %p1522_p7, %p241_p8 }
   0xd   : > { %s1524_s13 = sshll.u32 (!%p242_p9), %s1844_s28, 1  ;;  %s1586_s20 = sshll.u32 (!%p242_p9), %s1844_s28, 8 }
   0xe   : > { %245 = sbr.rel (%p242_p9) target bundleno = 2477 (0x9ad), region = 48  ;;  %p274_p10 = scmp.lt.s32.totalorder (!%p242_p9), %s1524_s13, 3 }
   0xf   : > { %s2046_s8 = scalar_lea.hbm (!%p242_p9), %s2088_s7, %s1586_s20  ;;  %s1782_s14 = smov (!%p242_p9), [#allocation2]  }
  0x10   : > { %s1722_s28 = sshll.u32 (!%p242_p9), %s1782_s14, 4  ;;  %s1723_s28 = int_to_ptr.vmem [resolvable:$false] %s1722_s28 }
  0x11   : > { %s1724_s15 = scalar_lea.vmem (!%p242_p9), %s1723_s28, 512 }
  0x13   : > { %v1780_v0 = vmov 0.0   ;;  %v1781_v1 = vmov 0   ;;  %v285_v2 = vld [vmem:[%s2083_s2 + $0x8] sm:$0xff]  ;;  %s2096_s13 = smov (!%p274_p10, %s1524_s13), 3  ;;  %v284_v3 = vld [vmem:[%s2083_s2] sm:$0xff]  ;;  %vm296_vm0 = vcmask 64512  }
  0x14   : > { %367 = vmatprep.mubr.f32.mxu0 %v1780_v0  ;;  %1628 = vset.pattern.permute.xlu0 %v1781_v1  ;;  %s1525_s18 = sshll.u32 %s2096_s13, 3  ;;  %v280_v4 = vld [vmem:[%s2082_s1] sm:$0xff]  ;;  %v1533_v7 = vld [vmem:[%s2085_s4 + $0x18] sm:$0xff]  ;;  %v281_v8 = vld [vmem:[%s2082_s1 + $0x8] sm:$0xff]  ;;  %vm402_vm1 = vcmask 130048  }
  0x15   : > { %293 = vperm.xlu0 %1628, %v285_v2   ;;  %473 = vmatprep.mubr.f32.mxu1 %v1780_v0  ;;  %s277_s21 = scalar_lea.vmem %s2081_s0, %s1525_s18  ;;  %v1539_v9 = vld [vmem:[%s2085_s4 + $0x28] sm:$0xff]  ;;  %v1545_v10 = vld [vmem:[%s2085_s4 + $0x38] sm:$0xff]  ;;  %v1351_v16 = vld [vmem:[%s2087_s6] sm:$0xff]  ;;  %s270_s18 = sand.u32 1, %s1770_s25  }
  0x16   : > { %1629 = vset.pattern.permute.xlu1 %v1781_v1  ;;  %v283_v5 = vld [vmem:[%s277_s21 + $0x8] sm:$0xff]  ;;  %v282_v6 = vld [vmem:[%s277_s21] sm:$0xff]  ;;  %v1557_v12 = vld [vmem:[%s2085_s4 + $0x58] sm:$0xff]  ;;  %s1523_s19 = sshll.u32 %s270_s18, 4  ;;  %s1446_s9 = scalar_lea.sflag [#allocation3], %s270_s18 }
  0x17   : > { %333 = vmatprep.subr.mxu0 %v283_v5  ;;  %v1551_v11 = vld [vmem:[%s2085_s4 + $0x48] sm:$0xff]  ;;  %v1569_v14 = vld [vmem:[%s2085_s4 + $0x78] sm:$0xff]  ;;  %v390_v18 = vld [vmem:[%s2085_s4] sm:$0xff]  ;;  %s272_s21 = scalar_lea.vmem [#allocation2], %s1523_s19 }
  0x18   : > { %334 = vmatpush1.msra.mxu0 %v282_v6  ;;  %v1563_v13 = vld [vmem:[%s2085_s4 + $0x68] sm:$0xff]  ;;  %v1532_v19 = vld [vmem:[%s2085_s4 + $0x10] sm:$0xff]  ;;  %v1538_v20 = vld [vmem:[%s2085_s4 + $0x20] sm:$0xff]  ;;  %s1460_s22 = sshll.u32 %s272_s21, 4  ;;  %s1461_s22 = int_to_ptr.vmem [resolvable:$true] %s1460_s22 }
  0x19   : > { %288 = vperm.xlu0 %1628, %v284_v3   ;;  %1526 = vmatmul.mubr.msk.f32.vlgmr.msra.gmra.mxu0 %vm296_vm0, %v280_v4  ;;  %v1575_v15 = vld [vmem:[%s2085_s4 + $0x88] sm:$0xff]  ;;  %v1544_v21 = vld [vmem:[%s2085_s4 + $0x30] sm:$0xff]  ;;  %v1550_v22 = vld [vmem:[%s2085_s4 + $0x40] sm:$0xff]  ;;  %s1718_s13 = scalar_lea.vmem %s1461_s22, 256  ;;  %p1725_p0 = scmp.lt.s32.totalorder %s1461_s22, %s1723_s28 }
  0x1a   : > { %373 = vmatprep.mubr.f32.mxu0 %v1780_v0  ;;  %v391_v17 = vld [vmem:[%s2085_s4 + $0x8] sm:$0xff]  ;;  %v1556_v23 = vld [vmem:[%s2085_s4 + $0x50] sm:$0xff]  ;;  %v1562_v24 = vld [vmem:[%s2085_s4 + $0x60] sm:$0xff]  ;;  %p1719_p11 = scmp.ne.s32.totalorder %s1461_s22, %s1718_s13  ;;  %p1726_p1 = scmp.lt.s32.totalorder %s1724_s15, %s1718_s13 }
  0x1b   : > { %399 = vperm.xlu1 %1629, %v391_v17   ;;  %v1568_v25 = vld [vmem:[%s2085_s4 + $0x70] sm:$0xff]  ;;  %v1574_v26 = vld [vmem:[%s2085_s4 + $0x80] sm:$0xff]  ;;  %v389_v46 = vld [vmem:[%s2084_s3 + $0x8] sm:$0xff] }
  0x1c   : > { %v388_v45 = vld [vmem:[%s2084_s3] sm:$0xff]  ;;  %v1530_v2 = vld [vmem:[%s2084_s3 + $0x10] sm:$0xff]  ;;  %v1531_v3 = vld [vmem:[%s2084_s3 + $0x18] sm:$0xff]  ;;  %p1720_p12 = pnand %p1719_p11, %p1861_p5  ;;  %p1727_p2 = por %p1726_p1, %p1725_p0 }
  0x1d   : > { %507 = vperm.xlu0 %1628, %v1533_v7   ;;  %1527 = vmatmul.mubr.msk.f32.gmra.mxu0 %vm296_vm0, %v281_v8 }
  0x1e   : > { %580 = vmatprep.mubr.f32.mxu0 %v1780_v0  ;;  %p1721_p13 = pneg %p1720_p12 }
  0x1f   : > { %394 = vperm.xlu1 %1629, %v390_v18  }
  0x20   : > { %p1728_p3 = pnand %p1727_p2, %p1721_p13 }
  0x21   : > { %614 = vperm.xlu0 %1628, %v1539_v9  }
  0x23   : > { %502 = vperm.xlu1 %1629, %v1532_v19  }
  0x25   : > { %721 = vperm.xlu0 %1628, %v1545_v10  }
  0x27   : > { %609 = vperm.xlu1 %1629, %v1538_v20  }
  0x29   : > { %828 = vperm.xlu0 %1628, %v1551_v11  }
  0x2b   : > { %716 = vperm.xlu1 %1629, %v1544_v21  }
  0x2d   : > { %935 = vperm.xlu0 %1628, %v1557_v12  }
  0x2f   : > { %823 = vperm.xlu1 %1629, %v1550_v22   ;;  %v1536_v22 = vld [vmem:[%s2084_s3 + $0x20] sm:$0xff] }
  0x31   : > { %1042 = vperm.xlu0 %1628, %v1563_v13  }
  0x33   : > { %930 = vperm.xlu1 %1629, %v1556_v23   ;;  %v1537_v23 = vld [vmem:[%s2084_s3 + $0x28] sm:$0xff] }
  0x35   : > { %1149 = vperm.xlu0 %1628, %v1569_v14  }
  0x37   : > { %1037 = vperm.xlu1 %1629, %v1562_v24  }
  0x39   : > { %1256 = vperm.xlu0 %1628, %v1575_v15  }
  0x3b   : > { %1144 = vperm.xlu1 %1629, %v1568_v25  }
  0x3d   : > { %1354 = vperm.xlu0 %1628, %v1351_v16  }
  0x3f   : > { %1251 = vperm.xlu1 %1629, %v1574_v26  }
  0x90   : > { %v294_v27 = vpop.permute.xlu0 %293 }
  0x94   : > { %v289_v29 = vpop.permute.xlu0 %288 }
  0x96   : > { %v400_v47 = vpop.permute.xlu1 %399 }
  0x98   : > { %v508_v8 = vpop.permute.xlu0 %507 }
  0x9a   : > { %v395_v49 = vpop.permute.xlu1 %394 }
  0x9e   : > { %v503_v5 = vpop.permute.xlu1 %502 }
  0xa2   : > { %v610_v25 = vpop.permute.xlu1 %609 }
  0xd9   : > { %v369_v28 = vpop.f32.mrf.mxu0 }
  0xda   : > { %v370_v34 = vadd.f32 %v369_v28, %v289_v29  ;;  %v615_v28 = vpop.permute.xlu0 %614 }
  0xdb   : > { %v371_v30 = vpop.f32.mrf.mxu0 }
  0xdc   : > { %v372_v31 = vadd.f32 %v371_v30, %v289_v29 }
  0xdd   : > { %v375_v32 = vpop.f32.mrf.mxu0 }
  0xde   : > { %v376_v33 = vadd.f32 %v375_v32, %v294_v27  ;;  %1630 = vtanh.f32 %v372_v31 }
  0xdf   : > { %v377_v35 = vpop.f32.mrf.mxu0 }
  0xe0   : > { %v378_v36 = vadd.f32 %v377_v35, %v294_v27  ;;  %1632 = vtanh.f32 %v376_v33 }
  0xe2   : > { %1634 = vtanh.f32 %v378_v36 }
  0xe3   : > { %1636 = vtanh.f32 %v370_v34 }
  0xeb   : > { %v1631_v37 = vpop.eup %1630 }
  0xec   : > { %v385_v43 = vmul.f32 4.5, %v1631_v37 }
  0xed   : > { %v1633_v38 = vpop.eup %1632 }
  0xee   : > { %v386_v42 = vmul.f32 4.5, %v1633_v38 }
  0xef   : > { %v1635_v39 = vpop.eup %1634 }
  0xf0   : > { %v1637_v40 = vpop.eup %1636  ;;  %v387_v41 = vmul.f32 4.5, %v1635_v39 }
  0xf1   : > { %v384_v44 = vmul.f32 4.5, %v1637_v40 }
  0xf2   : > { %437 = vmatprep.subr.mxu1 %v387_v41 }
  0xf3   : > { %438 = vmatpush1.msra.mxu1 %v386_v42  ;;  %v1542_v42 = vld [vmem:[%s2084_s3 + $0x30] sm:$0xff] }
  0xf4   : > { %439 = vmatprep.subr.mxu1 %v385_v43  ;;  %v1543_v43 = vld [vmem:[%s2084_s3 + $0x38] sm:$0xff] }
  0xf5   : > { %440 = vmatpush1.msra.mxu1 %v384_v44 }
  0xf6   : > { %1528 = vmatmul.mubr.msk.f32.vlgmr.msra.gmra.mxu1 %vm402_vm1, %v388_v45  ;;  %v717_v45 = vpop.permute.xlu1 %716 }
  0xf7   : > { %479 = vmatprep.mubr.f32.mxu1 %v1780_v0 }
  0xfa   : > { %1529 = vmatmul.mubr.msk.f32.gmra.mxu1 %vm402_vm1, %v389_v46 }
  0xfb   : > { %687 = vmatprep.mubr.f32.mxu1 %v1780_v0 }
 0x1b6   : > { %v475_v48 = vpop.f32.mrf.mxu1 }
 0x1b7   : > { %v476_v54 = vadd.f32 %v475_v48, %v395_v49  ;;  %v722_v48 = vpop.permute.xlu0 %721 }
 0x1b8   : > { %v477_v50 = vpop.f32.mrf.mxu1 }
 0x1b9   : > { %v478_v51 = vadd.f32 %v477_v50, %v395_v49 }
 0x1ba   : > { %v481_v52 = vpop.f32.mrf.mxu1 }
 0x1bb   : > { %v482_v53 = vadd.f32 %v481_v52, %v400_v47  ;;  %1638 = vtanh.f32 %v478_v51 }
 0x1bc   : > { %v483_v55 = vpop.f32.mrf.mxu1 }
 0x1bd   : > { %v484_v56 = vadd.f32 %v483_v55, %v400_v47  ;;  %1640 = vtanh.f32 %v482_v53 }
 0x1bf   : > { %1642 = vtanh.f32 %v484_v56 }
 0x1c0   : > { %1644 = vtanh.f32 %v476_v54 }
 0x1c8   : > { %v1639_v57 = vpop.eup %1638 }
 0x1c9   : > { %v491_v63 = vmul.f32 4.5, %v1639_v57 }
 0x1ca   : > { %v1641_v58 = vpop.eup %1640 }
 0x1cb   : > { %v492_v62 = vmul.f32 4.5, %v1641_v58 }
 0x1cc   : > { %v1643_v59 = vpop.eup %1642 }
 0x1cd   : > { %v1645_v60 = vpop.eup %1644  ;;  %v493_v61 = vmul.f32 4.5, %v1643_v59 }
 0x1ce   : > { %v490_v1 = vmul.f32 4.5, %v1645_v60 }
 0x1cf   : > { %544 = vmatprep.subr.mxu0 %v493_v61 }
 0x1d0   : > { %545 = vmatpush1.msra.mxu0 %v492_v62  ;;  %v1548_v62 = vld [vmem:[%s2084_s3 + $0x40] sm:$0xff] }
 0x1d1   : > { %546 = vmatprep.subr.mxu0 %v491_v63  ;;  %v1549_v63 = vld [vmem:[%s2084_s3 + $0x48] sm:$0xff] }
 0x1d2   : > { %547 = vmatpush1.msra.mxu0 %v490_v1 }
 0x1d3   : > { %1534 = vmatmul.mubr.msk.f32.vlgmr.msra.gmra.mxu0 %vm402_vm1, %v1530_v2  ;;  %v824_v2 = vpop.permute.xlu1 %823 }
 0x1d4   : > { %586 = vmatprep.mubr.f32.mxu0 %v1780_v0 }
 0x1d7   : > { %1535 = vmatmul.mubr.msk.f32.gmra.mxu0 %vm402_vm1, %v1531_v3 }
 0x1d8   : > { %794 = vmatprep.mubr.f32.mxu0 %v1780_v0 }
 0x293   : > { %v582_v4 = vpop.f32.mrf.mxu0 }
 0x294   : > { %v583_v11 = vadd.f32 %v582_v4, %v503_v5 }
 0x295   : > { %v584_v6 = vpop.f32.mrf.mxu0 }
 0x296   : > { %v585_v7 = vadd.f32 %v584_v6, %v503_v5  ;;  %v829_v5 = vpop.permute.xlu0 %828 }
 0x297   : > { %v588_v9 = vpop.f32.mrf.mxu0 }
 0x298   : > { %v589_v10 = vadd.f32 %v588_v9, %v508_v8  ;;  %1646 = vtanh.f32 %v585_v7 }
 0x299   : > { %v590_v12 = vpop.f32.mrf.mxu0 }
 0x29a   : > { %v591_v13 = vadd.f32 %v590_v12, %v508_v8  ;;  %1648 = vtanh.f32 %v589_v10 }
 0x29c   : > { %1650 = vtanh.f32 %v591_v13 }
 0x29d   : > { %1652 = vtanh.f32 %v583_v11 }
 0x2a5   : > { %v1647_v14 = vpop.eup %1646 }
 0x2a6   : > { %v598_v20 = vmul.f32 4.5, %v1647_v14 }
 0x2a7   : > { %v1649_v15 = vpop.eup %1648 }
 0x2a8   : > { %v599_v19 = vmul.f32 4.5, %v1649_v15 }
 0x2a9   : > { %v1651_v16 = vpop.eup %1650 }
 0x2aa   : > { %v1653_v17 = vpop.eup %1652  ;;  %v600_v18 = vmul.f32 4.5, %v1651_v16 }
 0x2ab   : > { %v597_v21 = vmul.f32 4.5, %v1653_v17 }
 0x2ac   : > { %651 = vmatprep.subr.mxu1 %v600_v18 }
 0x2ad   : > { %652 = vmatpush1.msra.mxu1 %v599_v19  ;;  %v1554_v19 = vld [vmem:[%s2084_s3 + $0x50] sm:$0xff] }
 0x2ae   : > { %653 = vmatprep.subr.mxu1 %v598_v20  ;;  %v1555_v20 = vld [vmem:[%s2084_s3 + $0x58] sm:$0xff] }
 0x2af   : > { %654 = vmatpush1.msra.mxu1 %v597_v21 }
 0x2b0   : > { %1540 = vmatmul.mubr.msk.f32.vlgmr.msra.gmra.mxu1 %vm402_vm1, %v1536_v22  ;;  %v931_v22 = vpop.permute.xlu1 %930 }
 0x2b1   : > { %693 = vmatprep.mubr.f32.mxu1 %v1780_v0 }
 0x2b4   : > { %1541 = vmatmul.mubr.msk.f32.gmra.mxu1 %vm402_vm1, %v1537_v23 }
 0x2b5   : > { %901 = vmatprep.mubr.f32.mxu1 %v1780_v0 }
 0x370   : > { %v689_v24 = vpop.f32.mrf.mxu1 }
 0x371   : > { %v690_v31 = vadd.f32 %v689_v24, %v610_v25 }
 0x372   : > { %v691_v26 = vpop.f32.mrf.mxu1 }
 0x373   : > { %v692_v27 = vadd.f32 %v691_v26, %v610_v25  ;;  %v936_v25 = vpop.permute.xlu0 %935 }
 0x374   : > { %v695_v29 = vpop.f32.mrf.mxu1 }
 0x375   : > { %v696_v30 = vadd.f32 %v695_v29, %v615_v28  ;;  %1654 = vtanh.f32 %v692_v27 }
 0x376   : > { %v697_v32 = vpop.f32.mrf.mxu1 }
 0x377   : > { %v698_v33 = vadd.f32 %v697_v32, %v615_v28  ;;  %1656 = vtanh.f32 %v696_v30 }
 0x379   : > { %1658 = vtanh.f32 %v698_v33 }
 0x37a   : > { %1660 = vtanh.f32 %v690_v31 }
 0x382   : > { %v1655_v34 = vpop.eup %1654 }
 0x383   : > { %v705_v40 = vmul.f32 4.5, %v1655_v34 }
 0x384   : > { %v1657_v35 = vpop.eup %1656 }
 0x385   : > { %v706_v39 = vmul.f32 4.5, %v1657_v35 }
 0x386   : > { %v1659_v36 = vpop.eup %1658 }
 0x387   : > { %v1661_v37 = vpop.eup %1660  ;;  %v707_v38 = vmul.f32 4.5, %v1659_v36 }
 0x388   : > { %v704_v41 = vmul.f32 4.5, %v1661_v37 }
 0x389   : > { %758 = vmatprep.subr.mxu0 %v707_v38 }
 0x38a   : > { %759 = vmatpush1.msra.mxu0 %v706_v39  ;;  %v1560_v39 = vld [vmem:[%s2084_s3 + $0x60] sm:$0xff] }
 0x38b   : > { %760 = vmatprep.subr.mxu0 %v705_v40  ;;  %v1561_v40 = vld [vmem:[%s2084_s3 + $0x68] sm:$0xff] }
 0x38c   : > { %761 = vmatpush1.msra.mxu0 %v704_v41 }
 0x38d   : > { %1546 = vmatmul.mubr.msk.f32.vlgmr.msra.gmra.mxu0 %vm402_vm1, %v1542_v42  ;;  %v1038_v42 = vpop.permute.xlu1 %1037 }
 0x38e   : > { %800 = vmatprep.mubr.f32.mxu0 %v1780_v0 }
 0x391   : > { %1547 = vmatmul.mubr.msk.f32.gmra.mxu0 %vm402_vm1, %v1543_v43 }
 0x392   : > { %1008 = vmatprep.mubr.f32.mxu0 %v1780_v0 }
 0x44d   : > { %v796_v44 = vpop.f32.mrf.mxu0 }
 0x44e   : > { %v797_v51 = vadd.f32 %v796_v44, %v717_v45 }
 0x44f   : > { %v798_v46 = vpop.f32.mrf.mxu0 }
 0x450   : > { %v799_v47 = vadd.f32 %v798_v46, %v717_v45  ;;  %v1043_v45 = vpop.permute.xlu0 %1042 }
 0x451   : > { %v802_v49 = vpop.f32.mrf.mxu0 }
 0x452   : > { %v803_v50 = vadd.f32 %v802_v49, %v722_v48  ;;  %1662 = vtanh.f32 %v799_v47 }
 0x453   : > { %v804_v52 = vpop.f32.mrf.mxu0 }
 0x454   : > { %v805_v53 = vadd.f32 %v804_v52, %v722_v48  ;;  %1664 = vtanh.f32 %v803_v50 }
 0x456   : > { %1666 = vtanh.f32 %v805_v53 }
 0x457   : > { %1668 = vtanh.f32 %v797_v51 }
 0x45f   : > { %v1663_v54 = vpop.eup %1662 }
 0x460   : > { %v812_v60 = vmul.f32 4.5, %v1663_v54 }
 0x461   : > { %v1665_v55 = vpop.eup %1664 }
 0x462   : > { %v813_v59 = vmul.f32 4.5, %v1665_v55 }
 0x463   : > { %v1667_v56 = vpop.eup %1666 }
 0x464   : > { %v1669_v57 = vpop.eup %1668  ;;  %v814_v58 = vmul.f32 4.5, %v1667_v56 }
 0x465   : > { %v811_v61 = vmul.f32 4.5, %v1669_v57 }
 0x466   : > { %865 = vmatprep.subr.mxu1 %v814_v58 }
 0x467   : > { %866 = vmatpush1.msra.mxu1 %v813_v59  ;;  %v1566_v59 = vld [vmem:[%s2084_s3 + $0x70] sm:$0xff] }
 0x468   : > { %867 = vmatprep.subr.mxu1 %v812_v60  ;;  %v1567_v60 = vld [vmem:[%s2084_s3 + $0x78] sm:$0xff] }
 0x469   : > { %868 = vmatpush1.msra.mxu1 %v811_v61 }
 0x46a   : > { %1552 = vmatmul.mubr.msk.f32.vlgmr.msra.gmra.mxu1 %vm402_vm1, %v1548_v62  ;;  %v1145_v62 = vpop.permute.xlu1 %1144 }
 0x46b   : > { %907 = vmatprep.mubr.f32.mxu1 %v1780_v0 }
 0x46e   : > { %1553 = vmatmul.mubr.msk.f32.gmra.mxu1 %vm402_vm1, %v1549_v63 }
 0x46f   : > { %1115 = vmatprep.mubr.f32.mxu1 %v1780_v0 }
 0x52a   : > { %v903_v1 = vpop.f32.mrf.mxu1 }
 0x52b   : > { %v904_v8 = vadd.f32 %v903_v1, %v824_v2 }
 0x52c   : > { %v905_v3 = vpop.f32.mrf.mxu1 }
 0x52d   : > { %v906_v4 = vadd.f32 %v905_v3, %v824_v2  ;;  %v1150_v2 = vpop.permute.xlu0 %1149 }
 0x52e   : > { %v909_v6 = vpop.f32.mrf.mxu1 }
 0x52f   : > { %v910_v7 = vadd.f32 %v909_v6, %v829_v5  ;;  %1670 = vtanh.f32 %v906_v4 }
 0x530   : > { %v911_v9 = vpop.f32.mrf.mxu1 }
 0x531   : > { %v912_v10 = vadd.f32 %v911_v9, %v829_v5  ;;  %1672 = vtanh.f32 %v910_v7 }
 0x533   : > { %1674 = vtanh.f32 %v912_v10 }
 0x534   : > { %1676 = vtanh.f32 %v904_v8 }
 0x53c   : > { %v1671_v11 = vpop.eup %1670 }
 0x53d   : > { %v919_v17 = vmul.f32 4.5, %v1671_v11 }
 0x53e   : > { %v1673_v12 = vpop.eup %1672 }
 0x53f   : > { %v920_v16 = vmul.f32 4.5, %v1673_v12 }
 0x540   : > { %v1675_v13 = vpop.eup %1674 }
 0x541   : > { %v1677_v14 = vpop.eup %1676  ;;  %v921_v15 = vmul.f32 4.5, %v1675_v13 }
 0x542   : > { %v918_v18 = vmul.f32 4.5, %v1677_v14 }
 0x543   : > { %972 = vmatprep.subr.mxu0 %v921_v15 }
 0x544   : > { %973 = vmatpush1.msra.mxu0 %v920_v16  ;;  %v1572_v16 = vld [vmem:[%s2084_s3 + $0x80] sm:$0xff] }
 0x545   : > { %974 = vmatprep.subr.mxu0 %v919_v17  ;;  %v1573_v17 = vld [vmem:[%s2084_s3 + $0x88] sm:$0xff] }
 0x546   : > { %975 = vmatpush1.msra.mxu0 %v918_v18 }
 0x547   : > { %1558 = vmatmul.mubr.msk.f32.vlgmr.msra.gmra.mxu0 %vm402_vm1, %v1554_v19  ;;  %v1252_v19 = vpop.permute.xlu1 %1251 }
 0x548   : > { %1014 = vmatprep.mubr.f32.mxu0 %v1780_v0 }
 0x54b   : > { %1559 = vmatmul.mubr.msk.f32.gmra.mxu0 %vm402_vm1, %v1555_v20 }
 0x54c   : > { %1222 = vmatprep.mubr.f32.mxu0 %v1780_v0 }
 0x607   : > { %v1010_v21 = vpop.f32.mrf.mxu0 }
 0x608   : > { %v1011_v28 = vadd.f32 %v1010_v21, %v931_v22 }
 0x609   : > { %v1012_v23 = vpop.f32.mrf.mxu0 }
 0x60a   : > { %v1013_v24 = vadd.f32 %v1012_v23, %v931_v22  ;;  %v1257_v22 = vpop.permute.xlu0 %1256 }
 0x60b   : > { %v1016_v26 = vpop.f32.mrf.mxu0 }
 0x60c   : > { %v1017_v27 = vadd.f32 %v1016_v26, %v936_v25  ;;  %1678 = vtanh.f32 %v1013_v24 }
 0x60d   : > { %v1018_v29 = vpop.f32.mrf.mxu0 }
 0x60e   : > { %v1019_v30 = vadd.f32 %v1018_v29, %v936_v25  ;;  %1680 = vtanh.f32 %v1017_v27 }
 0x610   : > { %1682 = vtanh.f32 %v1019_v30 }
 0x611   : > { %1684 = vtanh.f32 %v1011_v28 }
 0x619   : > { %v1679_v31 = vpop.eup %1678 }
 0x61a   : > { %v1026_v37 = vmul.f32 4.5, %v1679_v31 }
 0x61b   : > { %v1681_v32 = vpop.eup %1680 }
 0x61c   : > { %v1027_v36 = vmul.f32 4.5, %v1681_v32 }
 0x61d   : > { %v1683_v33 = vpop.eup %1682 }
 0x61e   : > { %v1685_v34 = vpop.eup %1684  ;;  %v1028_v35 = vmul.f32 4.5, %v1683_v33 }
 0x61f   : > { %v1025_v38 = vmul.f32 4.5, %v1685_v34 }
 0x620   : > { %1079 = vmatprep.subr.mxu1 %v1028_v35  ;;  %v1350_v35 = vld [vmem:[%s2086_s5] sm:$0xff] }
 0x621   : > { %1080 = vmatpush1.msra.mxu1 %v1027_v36  ;;  %v1355_v36 = vpop.permute.xlu0 %1354 }
 0x622   : > { %1081 = vmatprep.subr.mxu1 %v1026_v37 }
 0x623   : > { %1082 = vmatpush1.msra.mxu1 %v1025_v38 }
 0x624   : > { %1564 = vmatmul.mubr.msk.f32.vlgmr.msra.gmra.mxu1 %vm402_vm1, %v1560_v39 }
 0x625   : > { %1121 = vmatprep.mubr.f32.mxu1 %v1780_v0 }
 0x628   : > { %1565 = vmatmul.mubr.msk.f32.gmra.mxu1 %vm402_vm1, %v1561_v40 }
 0x629   : > { %1329 = vmatprep.mubr.f32.mxu1 %v1780_v0 }
 0x6e4   : > { %v1117_v41 = vpop.f32.mrf.mxu1 }
 0x6e5   : > { %v1118_v48 = vadd.f32 %v1117_v41, %v1038_v42 }
 0x6e6   : > { %v1119_v43 = vpop.f32.mrf.mxu1 }
 0x6e7   : > { %v1120_v44 = vadd.f32 %v1119_v43, %v1038_v42 }
 0x6e8   : > { %v1123_v46 = vpop.f32.mrf.mxu1 }
 0x6e9   : > { %v1124_v47 = vadd.f32 %v1123_v46, %v1043_v45  ;;  %1686 = vtanh.f32 %v1120_v44 }
 0x6ea   : > { %v1125_v49 = vpop.f32.mrf.mxu1 }
 0x6eb   : > { %v1126_v50 = vadd.f32 %v1125_v49, %v1043_v45  ;;  %1688 = vtanh.f32 %v1124_v47 }
 0x6ed   : > { %1690 = vtanh.f32 %v1126_v50 }
 0x6ee   : > { %1692 = vtanh.f32 %v1118_v48 }
 0x6f6   : > { %v1687_v51 = vpop.eup %1686 }
 0x6f7   : > { %v1133_v57 = vmul.f32 4.5, %v1687_v51 }
 0x6f8   : > { %v1689_v52 = vpop.eup %1688 }
 0x6f9   : > { %v1134_v56 = vmul.f32 4.5, %v1689_v52 }
 0x6fa   : > { %v1691_v53 = vpop.eup %1690 }
 0x6fb   : > { %v1693_v54 = vpop.eup %1692  ;;  %v1135_v55 = vmul.f32 4.5, %v1691_v53 }
 0x6fc   : > { %v1132_v58 = vmul.f32 4.5, %v1693_v54 }
 0x6fd   : > { %1186 = vmatprep.subr.mxu0 %v1135_v55 }
 0x6fe   : > { %1187 = vmatpush1.msra.mxu0 %v1134_v56 }
 0x6ff   : > { %1188 = vmatprep.subr.mxu0 %v1133_v57 }
 0x700   : > { %1189 = vmatpush1.msra.mxu0 %v1132_v58 }
 0x701   : > { %1570 = vmatmul.mubr.msk.f32.vlgmr.msra.gmra.mxu0 %vm402_vm1, %v1566_v59 }
 0x702   : > { %1228 = vmatprep.mubr.f32.mxu0 %v1780_v0 }
 0x705   : > { %1571 = vmatmul.mubr.msk.f32.gmra.mxu0 %vm402_vm1, %v1567_v60 }
 0x706   : > { %1424 = vmatprep.mubr.f32.mxu0 %v1780_v0 }
 0x7c1   : > { %v1224_v61 = vpop.f32.mrf.mxu0 }
 0x7c2   : > { %v1225_v5 = vadd.f32 %v1224_v61, %v1145_v62 }
 0x7c3   : > { %v1226_v63 = vpop.f32.mrf.mxu0 }
 0x7c4   : > { %v1227_v1 = vadd.f32 %v1226_v63, %v1145_v62 }
 0x7c5   : > { %v1230_v3 = vpop.f32.mrf.mxu0 }
 0x7c6   : > { %v1231_v4 = vadd.f32 %v1230_v3, %v1150_v2  ;;  %1694 = vtanh.f32 %v1227_v1 }
 0x7c7   : > { %v1232_v6 = vpop.f32.mrf.mxu0 }
 0x7c8   : > { %v1233_v7 = vadd.f32 %v1232_v6, %v1150_v2  ;;  %1696 = vtanh.f32 %v1231_v4 }
 0x7ca   : > { %1698 = vtanh.f32 %v1233_v7 }
 0x7cb   : > { %1700 = vtanh.f32 %v1225_v5 }
 0x7d3   : > { %v1695_v8 = vpop.eup %1694 }
 0x7d4   : > { %v1240_v14 = vmul.f32 4.5, %v1695_v8 }
 0x7d5   : > { %v1697_v9 = vpop.eup %1696 }
 0x7d6   : > { %v1241_v13 = vmul.f32 4.5, %v1697_v9 }
 0x7d7   : > { %v1699_v10 = vpop.eup %1698 }
 0x7d8   : > { %v1701_v11 = vpop.eup %1700  ;;  %v1242_v12 = vmul.f32 4.5, %v1699_v10 }
 0x7d9   : > { %v1239_v15 = vmul.f32 4.5, %v1701_v11 }
 0x7da   : > { %1293 = vmatprep.subr.mxu1 %v1242_v12 }
 0x7db   : > { %1294 = vmatpush1.msra.mxu1 %v1241_v13 }
 0x7dc   : > { %1295 = vmatprep.subr.mxu1 %v1240_v14 }
 0x7dd   : > { %1296 = vmatpush1.msra.mxu1 %v1239_v15 }
 0x7de   : > { %1576 = vmatmul.mubr.msk.f32.vlgmr.msra.gmra.mxu1 %vm402_vm1, %v1572_v16 }
 0x7df   : > { %1335 = vmatprep.mubr.f32.mxu1 %v1780_v0 }
 0x7e2   : > { %1577 = vmatmul.mubr.msk.f32.gmra.mxu1 %vm402_vm1, %v1573_v17 }
 0x89e   : > { %v1331_v18 = vpop.f32.mrf.mxu1 }
 0x89f   : > { %v1332_v25 = vadd.f32 %v1331_v18, %v1252_v19 }
 0x8a0   : > { %v1333_v20 = vpop.f32.mrf.mxu1 }
 0x8a1   : > { %v1334_v21 = vadd.f32 %v1333_v20, %v1252_v19 }
 0x8a2   : > { %v1337_v23 = vpop.f32.mrf.mxu1 }
 0x8a3   : > { %v1338_v24 = vadd.f32 %v1337_v23, %v1257_v22  ;;  %1702 = vtanh.f32 %v1334_v21 }
 0x8a4   : > { %v1339_v26 = vpop.f32.mrf.mxu1 }
 0x8a5   : > { %v1340_v27 = vadd.f32 %v1339_v26, %v1257_v22  ;;  %1704 = vtanh.f32 %v1338_v24 }
 0x8a7   : > { %1706 = vtanh.f32 %v1340_v27 }
 0x8a8   : > { %1708 = vtanh.f32 %v1332_v25 }
 0x8b0   : > { %v1703_v0 = vpop.eup %1702 }
 0x8b1   : > { %v1347_v33 = vmul.f32 4.5, %v1703_v0 }
 0x8b2   : > { %v1705_v28 = vpop.eup %1704 }
 0x8b3   : > { %v1348_v32 = vmul.f32 4.5, %v1705_v28 }
 0x8b4   : > { %v1707_v29 = vpop.eup %1706 }
 0x8b5   : > { %v1709_v30 = vpop.eup %1708  ;;  %v1349_v31 = vmul.f32 4.5, %v1707_v29 }
 0x8b6   : > { %v1346_v34 = vmul.f32 4.5, %v1709_v30 }
 0x8b7   : > { %1388 = vmatprep.subr.mxu0 %v1349_v31 }
 0x8b8   : > { %1389 = vmatpush1.msra.mxu0 %v1348_v32 }
 0x8b9   : > { %1390 = vmatprep.subr.mxu0 %v1347_v33 }
 0x8ba   : > { %1391 = vmatpush1.msra.mxu0 %v1346_v34 }
 0x8bb   : > { %1578 = vmatmul.mubr.msk.f32.vlgmr.msra.gmra.mxu0 %vm402_vm1, %v1350_v35 }
 0x97b   : > { %v1426_v37 = vpop.f32.mrf.mxu0 }
 0x97c   : > { %v1427_v38 = vadd.f32 %v1426_v37, %v1355_v36 }
 0x97d   : > { %v1428_v39 = vpop.f32.mrf.mxu0 }
 0x97e   : > { %v1579_v40 = vmul.f32 -1.442695, %v1427_v38  ;;  %v1429_v41 = vadd.f32 %v1428_v39, %v1355_v36 }
 0x980   : > { %1710 = vpow2.f32 %v1579_v40  ;;  %v1580_v42 = vmul.f32 -1.442695, %v1429_v41 }
 0x982   : > { %1712 = vpow2.f32 %v1580_v42 }
 0x98d   : > { %v1711_v43 = vpop.eup %1710 }
 0x98e   : > { %v1437_v44 = vadd.f32 1.0, %v1711_v43 }
 0x98f   : > { %v1713_v45 = vpop.eup %1712 }
 0x990   : > { %1714 = vrcp.f32 %v1437_v44  ;;  %v1438_v46 = vadd.f32 1.0, %v1713_v45 }
 0x992   : > { %1716 = vrcp.f32 %v1438_v46 }
 0x99d   : > { %v1715_v47 = vpop.eup %1714 }
 0x99e   : > { %1443 = vst [vmem:[%s272_s21] sm:$0xff] %v1715_v47 }
 0x99f   : > { %v1717_v48 = vpop.eup %1716 }
 0x9a0   : > { %1444 = vst [vmem:[%s272_s21 + $0x8] sm:$0xff] %v1717_v48 }
 0x9a1   : > { %1731 = shalt.err (!%p1728_p3)
}
 0x9a2   : > { %s1732_s16 = scalar_lea.hbm %s2046_s8, 256  ;;  %s1736_s19 = scalar_lea.hbm %s2088_s7, 512 }
 0x9a3   : > { %p1733_p4 = scmp.ne.s32.totalorder %s2046_s8, %s1732_s16  ;;  %p1737_p9 = scmp.lt.s32.totalorder %s2046_s8, %s2088_s7 }
 0x9a4   : > { %p1738_p10 = scmp.lt.s32.totalorder %s1736_s19, %s1732_s16 }
 0x9a5   : > { %p1734_p7 = pnand %p1733_p4, %p1861_p5 }
 0x9a6   : > { %p1739_p11 = por %p1738_p10, %p1737_p9 }
 0x9a7   : > { %p1735_p8 = pneg %p1734_p7 }
 0x9a9   : > { %p1740_p12 = pnand %p1739_p11, %p1735_p8 }
 0x9ab   : > { %1743 = shalt.err (!%p1740_p12)
}
 0x9ac   : > { %1587 = dma.vmem_to_hbm [thread:$0]  (%p1861_p5), %s1461_s22, 256, %s2046_s8, %s1446_s9  }
 0x9ad PF: > { %p1593_p13 = scmp.ge.s32.totalorder %s1778_s27, 2  ;;  %s1472_s23 = sand.u32 1, %s1766_s24  }
 0x9ae   : > { %s1473_s29 = scalar_lea.sflag [#allocation3], %s1472_s23 }
 0x9af   : > { %p1590_p0 = pnand %p1593_p13, %p1865_p6 }
 0x9b1   : > { %p1591_p1 = pneg %p1590_p0 }
 0x9b3   : > { %1761 = dma.done.wait (%p1591_p1), %s1473_s29, 256  }
 0x9b4   : > { %1763 = vsyncadd (%p1591_p1), %s1473_s29, 4294967040  ;;  %p17_p2 = scmp.ge.s32.totalorder %s1848_s30, 4   ;;  %s2091_s24 = smov %s1770_s25 }
 0x9b5   : > { %s2092_s25 = smov %s1774_s26  ;;  %s2093_s26 = smov %s1859_s10 }
 0x9b6   : > { %s2094_s27 = smov %s1848_s30  ;;  %19 = sbr.rel (!%p17_p2) target bundleno = 3 (0x3), region = 99 }
 0x9bb   :  { %1478 = vsyncpa [#allocation3], 1 }
 0x9bc   :  { %1480 = vsyncpa [#allocation3 + $0x1], 1 }

</bundles_post_ra>
